<compile_context>
chip_gen: v7x
topology: tpu7x:2x2x1
jax: 0.10.0
libtpu: 0.0.40
codegen_flags: <defaults>
</compile_context>

<pallas_src>
import jax
import jax.numpy as jnp
from jax.experimental import pallas as pl
from jax.experimental.pallas import tpu as pltpu

BANDWIDTH_MULTIPLIERS = (0.5, 1.0, 5.0, 10.0, 20.0, 40.0)  # RBF.__init__ (bandwidth=None -> 1)
_PAD_NORM = 1e9  # squared-norm sentinel for padded rows -> exp underflows to exactly 0


def _round_up(n, m):
    return (n + m - 1) // m * m


def _rbf_sum_power_chained(d2):
    """sum_g exp(-0.5*d2/g^2) for g in {0.5,1,5,10,20,40} using only 2 exps.

    Coefficients 0.5/g^2: {40,20,10,5} are {c,4c,16c,64c} with c=3.125e-4, and
    {1,0.5} are {0.5,2.0}; higher powers come from VPU squarings (EUP relief).
    """
    a1 = jnp.exp(d2 * jnp.float32(-0.5 / 1600.0))      # g = 40
    a4 = a1 * a1
    a4 = a4 * a4                                        # g = 20
    a16 = a4 * a4
    a16 = a16 * a16                                     # g = 10
    a64 = a16 * a16
    a64 = a64 * a64                                     # g = 5
    b1 = jnp.exp(d2 * jnp.float32(-0.5))                # g = 1
    b4 = b1 * b1
    b4 = b4 * b4                                        # g = 0.5
    return a1 + a4 + a16 + a64 + b1 + b4


def _mmd_tile_kernel(bi_ref, bj_ref, w_ref,   # scalar-prefetch (SMEM)
                     zl_ref, zr_ref,          # tiled inputs (VMEM)
                     out_ref):                # (8, tile) per-split partial sums
    c = pl.program_id(0)   # core split ("parallel")
    t = pl.program_id(1)   # task within split ("arbitrary" reduction)

    @pl.when(t == 0)
    def _init():
        out_ref[...] = jnp.zeros_like(out_ref)

    # Norm-folded pairwise squared distances:
    #   zl_i = [z_i, -0.5*||z_i||^2, 1],  zr_j = [z_j, 1, -0.5*||z_j||^2]
    #   => zl_i . zr_j = z_i.z_j - 0.5*(n_i + n_j)  =>  d2 = -2 * ab
    # Padded rows carry a 1e9 sentinel norm, so their pairs underflow to 0.
    zl = zl_ref[...]                                    # (tile, dp)
    zr = zr_ref[...]                                    # (tile, dp)
    ab = jax.lax.dot_general(zl, zr, (((1,), (1,)), ((), ())),
                             preferred_element_type=jnp.float32)   # MXU (tile, tile)
    # maximum() clamps tiny negative rounding residues (deliberate, documented).
    d2 = jnp.maximum(-2.0 * ab, 0.0)

    k = _rbf_sum_power_chained(d2)                      # (tile, tile)
    # Partial sublane sums -> (8, tile): full-block, lane-dense accumulate into
    # the per-split output block (no masked partial stores, no full XLU reduce).
    part = jnp.sum(k.reshape(-1, 8, k.shape[1]), axis=0)
    out_ref[...] += part * w_ref[c, t]                  # w already carries all scaling


def mmd_loss(x, y, *, tile=None, num_splits=2):
    """Pallas TPU implementation of MMDLoss(RBF()).forward(X, Y) -> scalar.

    tile=None picks an adaptive tile: a single block per set (rows padded to a
    multiple of 8) for small problems, else 128/256 minimizing padding.  Pass
    tile=512 on v6e for very large N (raise vmem_limit_bytes if dp is large).
    num_splits: leading "parallel" grid axis (2 uses both TCs on v7x; harmless
    elsewhere).
    """
    x = jnp.asarray(x, jnp.float32)
    y = jnp.asarray(y, jnp.float32)
    xs, d = x.shape
    ys, dy = y.shape
    assert d == dy, "X and Y must have the same feature dimension"
    # Same hazard as the PyTorch reference (n^2 - n denominator); make it explicit.
    assert xs >= 2 and ys >= 2, "MMD loss requires at least 2 samples per set"

    # ---- adaptive tile choice --------------------------------------------
    if tile is None:
        r8 = max(_round_up(xs, 8), _round_up(ys, 8))
        if r8 <= 256:
            tile = r8                      # one block per set, minimal padding
        else:
            tile = min((128, 256),
                       key=lambda tl: (_round_up(xs, tl) + _round_up(ys, tl), -tl))

    # Contraction dim: leave >= 2 columns of 128-pad for the norm-fold columns.
    dp = _round_up(d + 2, 128)
    nxp = _round_up(xs, tile)
    nyp = _round_up(ys, tile)
    n_total = nxp + nyp

    # ---- host prep: augmented LHS/RHS copies of Z = [X;Y] ----------------
    norms = jnp.full((n_total,), _PAD_NORM, jnp.float32)
    norms = norms.at[:xs].set(jnp.sum(x * x, axis=-1))
    norms = norms.at[nxp:nxp + ys].set(jnp.sum(y * y, axis=-1))

    zl = jnp.zeros((n_total, dp), jnp.float32)
    zl = zl.at[:xs, :d].set(x).at[nxp:nxp + ys, :d].set(y)
    zl = zl.at[:, d].set(-0.5 * norms).at[:, d + 1].set(1.0)          # [z, -n/2, 1]
    zr = zl.at[:, d].set(1.0).at[:, d + 1].set(-0.5 * norms)          # [z, 1, -n/2]

    # ---- upper-triangular tile task list + pre-scaled weights ------------
    nb = n_total // tile
    nxb = nxp // tile
    tasks = [(i, j) for i in range(nb) for j in range(i, nb)]

    inv_xx = 1.0 / (xs * xs - xs)
    inv_yy = 1.0 / (ys * ys - ys)
    inv_xy = -2.0 / (xs * ys)

    def task_weight(i, j):
        sym = 1.0 if i == j else 2.0       # off-diagonal tiles counted twice
        if j < nxb:
            return sym * inv_xx            # XX block
        if i >= nxb:
            return sym * inv_yy            # YY block
        return inv_xy                      # XY block (appears once, upper tri)

    weights = [task_weight(i, j) for (i, j) in tasks]

    num_splits = max(1, min(int(num_splits), len(tasks)))
    per_split = -(-len(tasks) // num_splits)
    pad = num_splits * per_split - len(tasks)          # dummy tasks: w = 0
    bi = jnp.asarray([i for i, _ in tasks] + [0] * pad,
                     jnp.int32).reshape(num_splits, per_split)
    bj = jnp.asarray([j for _, j in tasks] + [0] * pad,
                     jnp.int32).reshape(num_splits, per_split)
    tw = jnp.asarray(weights + [0.0] * pad,
                     jnp.float32).reshape(num_splits, per_split)

    grid_spec = pltpu.PrefetchScalarGridSpec(
        num_scalar_prefetch=3,
        grid=(num_splits, per_split),
        in_specs=[
            pl.BlockSpec((tile, dp), lambda c, t, bi_r, bj_r, w_r: (bi_r[c, t], 0)),
            pl.BlockSpec((tile, dp), lambda c, t, bi_r, bj_r, w_r: (bj_r[c, t], 0)),
        ],
        # Per-split partial-sum block: resident across the reduction axis t,
        # distinct per parallel split c (output-as-accumulator, no scratch).
        out_specs=pl.BlockSpec((8, tile), lambda c, t, bi_r, bj_r, w_r: (c, 0)),
    )

    cost = pl.CostEstimate(
        flops=int(len(tasks) * (2 * tile * tile * dp + 24 * tile * tile)),
        transcendentals=int(len(tasks) * 2 * tile * tile),
        bytes_accessed=int(len(tasks) * 2 * tile * dp * 4
                           + n_total * dp * 4 + num_splits * 8 * tile * 4),
    )

    partial = pl.pallas_call(
        _mmd_tile_kernel,
        out_shape=jax.ShapeDtypeStruct((num_splits * 8, tile), jnp.float32),
        grid_spec=grid_spec,
        compiler_params=pltpu.CompilerParams(
            dimension_semantics=("parallel", "arbitrary")),
        cost_estimate=cost,
    )(bi, bj, tw, zl, zr)

    # Finalize in plain JAX: weights already carry all scaling; "- 6*eye" of the
    # reference == subtract 6 per real diagonal element -> 6/(xs-1) + 6/(ys-1).
    return jnp.sum(partial) - (6.0 / (xs - 1.0) + 6.0 / (ys - 1.0))


def mmd_loss_ref(x, y):
    """Pure-JAX reference mirroring the PyTorch code path."""
    z = jnp.concatenate([x, y], axis=0)
    d2 = jnp.sum((z[:, None, :] - z[None, :, :]) ** 2, axis=-1)
    mult = jnp.asarray(BANDWIDTH_MULTIPLIERS, jnp.float32)
    k = jnp.sum(
        jnp.exp(-0.5 * d2[None, ...] / (mult ** 2)[:, None, None]), axis=0
    ) - 6.0 * jnp.eye(z.shape[0], dtype=jnp.float32)
    xs, ys = x.shape[0], y.shape[0]
    xx = k[:xs, :xs].sum() / (xs * xs - xs)
    xy = k[:xs, xs:].mean()
    yy = k[xs:, xs:].sum() / (ys * ys - ys)
    return xx - 2.0 * xy + yy


if __name__ == "__main__":
    key = jax.random.PRNGKey(0)
    kx, ky = jax.random.split(key)

    # Small shapes consistent with the module's dense (N, N_input) inputs.
    X = jax.random.normal(kx, (8, 32), dtype=jnp.float32)
    Y = jax.random.normal(ky, (8, 32), dtype=jnp.float32) + 0.5

    out = jax.block_until_ready(mmd_loss(X, Y))
    ref = jax.block_until_ready(mmd_loss_ref(X, Y))
    assert jnp.isfinite(out), "non-finite kernel output"
    assert jnp.allclose(out, ref, rtol=5e-3, atol=1e-3), (out, ref)

    # Unequal sample counts + the module's N_input=100 feature width: exercises
    # row/feature padding, the norm-fold columns, adaptive tiling and the
    # XX/XY/YY tile weighting (plus one dummy task on the second split).
    k2, k3 = jax.random.split(ky)
    X2 = jax.random.normal(k2, (10, 100), dtype=jnp.float32)
    Y2 = jax.random.normal(k3, (7, 100), dtype=jnp.float32) * 1.3 + 0.3
    out2 = jax.block_until_ready(mmd_loss(X2, Y2))
    ref2 = jax.block_until_ready(mmd_loss_ref(X2, Y2))
    assert jnp.isfinite(out2), "non-finite kernel output (padded case)"
    assert jnp.allclose(out2, ref2, rtol=5e-3, atol=1e-3), (out2, ref2)

    # Larger case: multi-block task list, 128-tile path, both splits busy.
    k4, k5 = jax.random.split(k3)
    X3 = jax.random.normal(k4, (300, 100), dtype=jnp.float32)
    Y3 = jax.random.normal(k5, (250, 100), dtype=jnp.float32) * 0.9 + 0.2
    out3 = jax.block_until_ready(mmd_loss(X3, Y3))
    ref3 = jax.block_until_ready(mmd_loss_ref(X3, Y3))
    assert jnp.isfinite(out3), "non-finite kernel output (large case)"
    assert jnp.allclose(out3, ref3, rtol=5e-3, atol=1e-3), (out3, ref3)

    print("KERNEL_OK")
</pallas_src>

<mosaic_0001>
module attributes {stable_mosaic.version = 11 : i64} {
  func.func @_mmd_tile_kernel(%arg0: i32, %arg1: i32, %arg2: memref<2x2xi32, #tpu.memory_space<smem>>, %arg3: memref<2x2xi32, #tpu.memory_space<smem>>, %arg4: memref<2x2xf32, #tpu.memory_space<smem>>, %arg5: memref<8x128xf32, #tpu.memory_space<vmem>>, %arg6: memref<8x128xf32, #tpu.memory_space<vmem>>, %arg7: memref<8x8xf32, #tpu.memory_space<vmem>>) attributes {dimension_semantics = [#tpu.dimension_semantics<parallel>, #tpu.dimension_semantics<arbitrary>], iteration_bounds = array<i64: 2, 2>, scalar_prefetch = 3 : i64, scratch_operands = 0 : i64, tpu.core_type = #tpu.core_type<tc>, window_params = [{transform_indices = @transform_0, window_bounds = array<i64: 8, 128>}, {transform_indices = @transform_1, window_bounds = array<i64: 8, 128>}, {transform_indices = @transform_2, window_bounds = array<i64: 8, 8>}]} {
    %c0_i32 = arith.constant 0 : i32
    %0 = arith.cmpi eq, %arg1, %c0_i32 : i32
    %1 = arith.extui %0 : i1 to i32
    %c0_i32_0 = arith.constant 0 : i32
    %2 = arith.cmpi ne, %1, %c0_i32_0 : i32
    scf.if %2 {
      %cst_13 = arith.constant 0.000000e+00 : f32
      %39 = vector.broadcast %cst_13 : f32 to vector<8x8xf32>
      %c0_14 = arith.constant 0 : index
      %c0_15 = arith.constant 0 : index
      %40 = vector.load %arg7[%c0_14, %c0_15] : memref<8x8xf32, #tpu.memory_space<vmem>>, vector<8x8xf32>
      tpu.vector_store %arg7[%c0_14, %c0_15], %39 {strides = array<i32>} : memref<8x8xf32, #tpu.memory_space<vmem>>, vector<8x8xf32>,
    } else {
    }
    %c0 = arith.constant 0 : index
    %c0_1 = arith.constant 0 : index
    %3 = vector.load %arg5[%c0, %c0_1] : memref<8x128xf32, #tpu.memory_space<vmem>>, vector<8x128xf32>
    %c0_2 = arith.constant 0 : index
    %c0_3 = arith.constant 0 : index
    %4 = vector.load %arg6[%c0_2, %c0_3] : memref<8x128xf32, #tpu.memory_space<vmem>>, vector<8x128xf32>
    %cst = arith.constant dense<0.000000e+00> : vector<8x8xf32>
    %5 = tpu.matmul %3, %4, %cst {dimension_numbers = #tpu.dot_dimension_numbers<[1], [1], [0], [0], [0, 0, 1, 0], [], []>} : vector<8x128xf32>, vector<8x128xf32>, vector<8x8xf32> -> vector<8x8xf32>
    %cst_4 = arith.constant -2.000000e+00 : f32
    %6 = vector.broadcast %cst_4 : f32 to vector<8x8xf32>
    %7 = arith.mulf %6, %5 : vector<8x8xf32>
    %cst_5 = arith.constant 0.000000e+00 : f32
    %8 = vector.broadcast %cst_5 : f32 to vector<8x8xf32>
    %9 = arith.maximumf %7, %8 : vector<8x8xf32>
    %cst_6 = arith.constant -3.125000e-04 : f32
    %10 = vector.broadcast %cst_6 : f32 to vector<8x8xf32>
    %11 = arith.mulf %9, %10 : vector<8x8xf32>
    %12 = math.exp %11 : vector<8x8xf32>
    %13 = arith.mulf %12, %12 : vector<8x8xf32>
    %14 = arith.mulf %13, %13 : vector<8x8xf32>
    %15 = arith.mulf %14, %14 : vector<8x8xf32>
    %16 = arith.mulf %15, %15 : vector<8x8xf32>
    %17 = arith.mulf %16, %16 : vector<8x8xf32>
    %18 = arith.mulf %17, %17 : vector<8x8xf32>
    %cst_7 = arith.constant -5.000000e-01 : f32
    %19 = vector.broadcast %cst_7 : f32 to vector<8x8xf32>
    %20 = arith.mulf %9, %19 : vector<8x8xf32>
    %21 = math.exp %20 : vector<8x8xf32>
    %22 = arith.mulf %21, %21 : vector<8x8xf32>
    %23 = arith.mulf %22, %22 : vector<8x8xf32>
    %24 = arith.addf %12, %14 : vector<8x8xf32>
    %25 = arith.addf %24, %16 : vector<8x8xf32>
    %26 = arith.addf %25, %18 : vector<8x8xf32>
    %27 = arith.addf %26, %21 : vector<8x8xf32>
    %28 = arith.addf %27, %23 : vector<8x8xf32>
    %29 = vector.shape_cast %28 : vector<8x8xf32> to vector<1x8x8xf32>
    %cst_8 = arith.constant dense<0.000000e+00> : vector<8x8xf32>
    %30 = vector.multi_reduction <add>, %29, %cst_8 [0] : vector<1x8x8xf32> to vector<8x8xf32>
    %c0_9 = arith.constant 0 : index
    %c0_10 = arith.constant 0 : index
    %31 = vector.load %arg7[%c0_9, %c0_10] : memref<8x8xf32, #tpu.memory_space<vmem>>, vector<8x8xf32>
    %32 = arith.index_cast %arg0 : i32 to index
    %33 = arith.index_cast %arg1 : i32 to index
    %34 = memref.load %arg4[%32, %33] : memref<2x2xf32, #tpu.memory_space<smem>>
    %35 = vector.broadcast %34 : f32 to vector<8x8xf32>
    %36 = arith.mulf %30, %35 : vector<8x8xf32>
    %37 = arith.addf %31, %36 : vector<8x8xf32>
    %c0_11 = arith.constant 0 : index
    %c0_12 = arith.constant 0 : index
    %38 = vector.load %arg7[%c0_11, %c0_12] : memref<8x8xf32, #tpu.memory_space<vmem>>, vector<8x8xf32>
    tpu.vector_store %arg7[%c0_11, %c0_12], %37 {strides = array<i32>} : memref<8x8xf32, #tpu.memory_space<vmem>>, vector<8x8xf32>,
    return
  }
  func.func @transform_0(%arg0: i32, %arg1: i32, %arg2: memref<2x2xi32, #tpu.memory_space<smem>>, %arg3: memref<2x2xi32, #tpu.memory_space<smem>>, %arg4: memref<2x2xf32, #tpu.memory_space<smem>>) -> (i32, i32) {
    %0 = arith.index_cast %arg0 : i32 to index
    %1 = arith.index_cast %arg1 : i32 to index
    %2 = memref.load %arg2[%0, %1] : memref<2x2xi32, #tpu.memory_space<smem>>
    %c0_i32 = arith.constant 0 : i32
    %c0_i32_0 = arith.constant 0 : i32
    return %2, %c0_i32 : i32, i32
  }
  func.func @transform_1(%arg0: i32, %arg1: i32, %arg2: memref<2x2xi32, #tpu.memory_space<smem>>, %arg3: memref<2x2xi32, #tpu.memory_space<smem>>, %arg4: memref<2x2xf32, #tpu.memory_space<smem>>) -> (i32, i32) {
    %0 = arith.index_cast %arg0 : i32 to index
    %1 = arith.index_cast %arg1 : i32 to index
    %2 = memref.load %arg3[%0, %1] : memref<2x2xi32, #tpu.memory_space<smem>>
    %c0_i32 = arith.constant 0 : i32
    %c0_i32_0 = arith.constant 0 : i32
    return %2, %c0_i32 : i32, i32
  }
  func.func @transform_2(%arg0: i32, %arg1: i32, %arg2: memref<2x2xi32, #tpu.memory_space<smem>>, %arg3: memref<2x2xi32, #tpu.memory_space<smem>>, %arg4: memref<2x2xf32, #tpu.memory_space<smem>>) -> (i32, i32) {
    %c0_i32 = arith.constant 0 : i32
    %c0_i32_0 = arith.constant 0 : i32
    return %arg0, %c0_i32 : i32, i32
  }
}

</mosaic_0001>

<bundles_post_ra>
// kernel: tpu_custom_call.1
= control target key start
LH: loop header
LB: loop body
LE: loop exit
PB: predicated region body
PF: predicated region fallthrough
CT: control target
= control target key end

     0   :  { %s1183_s0 = inlined_call_operand.hbm [shape: s32[2,2], index: 0, kind: input, shape index: {}]   ;;  %s1184_s3 = inlined_call_operand.hbm [shape: f32[16,128], index: 3, kind: input, shape index: {}]   ;;  %s1185_s4 = inlined_call_operand.hbm [shape: f32[16,128], index: 4, kind: input, shape index: {}]   ;;  %s1186_s5 = inlined_call_operand.vmem [shape: f32[16,8], index: 5, kind: output, shape index: {}]   ;;  %s1187_s1 = inlined_call_operand.vmem [shape: s32[2,2], index: 1, kind: input, shape index: {}]   ;;  %s1188_s2 = inlined_call_operand.vmem [shape: f32[2,2], index: 2, kind: input, shape index: {}]  }
   0x1   :  { %s647_s20 = scalar_lea.hbm %s1183_s0, 32 }
   0x2   :  { %p648_p0 = scmp.ne.s32.totalorder %s1183_s0, %s647_s20  ;;  %p651_p1 = scmp.lt.u32.totalorder %s647_s20, %s1183_s0 }
   0x4   :  { %p653_p2 = pnand %p651_p1, %p648_p0 }
   0x6   :  { %656 = shalt.err (!%p653_p2)  }
   0x7   :  { %s839_s25 = smov [#allocation3]   ;;  %s12_s30 = sshll.u32 %s1187_s1, 4  ;;  %s13_s30 = int_to_ptr.vmem [resolvable:$true] %s12_s30 }
   0x8   :  { %11 = dma.hbm_to_smem %s1183_s0, 32, %s839_s25, [#allocation2] }
   0x9   :  { %s16_s8 = sshll.u32 %s1188_s2, 4  ;;  %s657_s9 = scalar_lea.vmem %s13_s30, 32  ;;  %s17_s8 = int_to_ptr.vmem [resolvable:$true] %s16_s8 }
   0xa   :  { %p658_p3 = scmp.ne.s32.totalorder %s13_s30, %s657_s9  ;;  %p662_p4 = scmp.lt.s32.totalorder %s13_s30, %s13_s30 }
   0xb   :  { %p663_p5 = scmp.lt.s32.totalorder %s657_s9, %s657_s9 }
   0xd   :  { %p664_p6 = por %p663_p5, %p662_p4 }
   0xf   :  { %p665_p7 = pnand %p664_p6, %p658_p3 }
  0x11   :  { %668 = shalt.err (!%p665_p7)  }
  0x12   :  { %s840_s10 = smov [#allocation4]   ;;  %s669_s0 = scalar_lea.vmem %s17_s8, 32 }
  0x13   :  { %15 = dma.vmem_to_smem %s13_s30, 32, %s840_s10, [#allocation2] }
  0x14   :  { %p670_p8 = scmp.ne.s32.totalorder %s17_s8, %s669_s0  ;;  %p674_p9 = scmp.lt.s32.totalorder %s17_s8, %s17_s8 }
  0x15   :  { %p675_p10 = scmp.lt.s32.totalorder %s669_s0, %s669_s0 }
  0x17   :  { %p676_p11 = por %p675_p10, %p674_p9 }
  0x19   :  { %p677_p12 = pnand %p676_p11, %p670_p8 }
  0x1b   :  { %680 = shalt.err (!%p677_p12)  }
  0x1c   :  { %s841_s1 = smov [#allocation5]  }
  0x1d   :  { %19 = dma.vmem_to_smem %s17_s8, 32, %s841_s1, [#allocation2] }
  0x1e   :  { %785 = dma.done.wait [#allocation2], 96 }
  0x1f   :  { %786 = vsyncadd [#allocation2], 4294967200 }
  0x20   :  { %21 = sfence }
  0x21   :  { %22 = vsyncpa [#allocation7], 0 }
  0x22   :  { %24 = vsyncpa [#allocation7 + $0x1], 0 }
  0x23   :  { %25 = vsyncpa [#allocation9], 0 }
  0x24   :  { %27 = vsyncpa [#allocation9 + $0x1], 0  ;;  %s895_s2 = smov 0   ;;  %s897_s11 = smov 0  }
  0x25   :  { %s899_s12 = smov 0   ;;  %s901_s13 = smov 0  }
  0x26   :  { %s903_s14 = smov 0   ;;  %s905_s15 = smov 0  }
  0x27   :  { %s907_s16 = smov 0   ;;  %s909_s17 = smov 0  }
  0x28   :  { %s911_s18 = smov 0   ;;  %s913_s19 = smov 0  }
  0x29   :  { %s915_s20 = smov 0  }
  0x2a LB: > { %1195 = sst [smem:[#allocation17_spill]] %s833_s19  ;;  %s42_s21 = sadd.s32 1, %s829_s18  ;;  %s837_s20 = sphi %s915_s20, %s33_s20   ;;  %s833_s19 = sphi %s913_s19, %s1216_s19   ;;  %s829_s18 = sphi %s911_s18, %s1224_s18   ;;  %s825_s17 = sphi %s909_s17, %s1214_s17   ;;  %s821_s16 = sphi %s907_s16, %s1223_s16   ;;  %s817_s15 = sphi %s905_s15, %s1222_s15   ;;  %s813_s14 = sphi %s903_s14, %s1221_s14   ;;  %s809_s13 = sphi %s901_s13, %s1220_s13   ;;  %s805_s12 = sphi %s899_s12, %s1219_s12   ;;  %s801_s11 = sphi %s897_s11, %s1218_s11   ;;  %s797_s2 = sphi %s895_s2, %s1217_s2  }
  0x2b   : > { %p43_p13 = scmp.ge.s32.totalorder %s42_s21, 2  ;;  %s45_s22 = sadd.s32 1, %s833_s19 }
  0x2c   : > { %s49_s23 = sshra.s32 %s829_s18, 7  ;;  %s54_s24 = sand.u32 127, %s829_s18 }
  0x2d   : > { %s1226_s21 = smov (%p43_p13, %s42_s21), 0  ;;  %s1228_s22 = smov (!%p43_p13, %s45_s22), %s833_s19 }
  0x2e   : > { %1196 = sst [smem:[#allocation18_spill]] %s1226_s21  ;;  %s500_s25 = sadd.s32 4294967295, %s837_s20  }
  0x2f   : > { %s51_s26 = sadd.s32 %s833_s19, %s49_s23  ;;  %p47_p0 = scmp.ge.s32.totalorder %s1228_s22, 2 }
  0x30   : > { %s502_s27 = sshll.u32 %s51_s26, 7  ;;  %s57_s29 = sshra.s32 %s1226_s21, 7 }
  0x31   : > { %s959_s28 = sadd.s32 %s502_s27, %s54_s24  ;;  %s1230_s22 = smov (%p47_p0, %s1228_s22), 0 }
  0x32   : > { %1197 = sst [smem:[#allocation19_spill]] %s1230_s22  ;;  %s62_s6 = sand.u32 127, %s1226_s21 }
  0x33   : > { %s56_s30 = sld [smem:[#allocation3 + %s959_s28]]  ;;  %s59_s7 = sadd.s32 %s57_s29, %s1230_s22 }
  0x34   : > { %p75_p1 = scmp.ne.s32.totalorder %s817_s15, %s813_s14  ;;  %s503_s8 = sshll.u32 %s59_s7, 7 }
  0x35   : > { %p1193_p2 = scmp.eq.s32.totalorder %s837_s20, 0  ;;  %s63_s9 = sadd.s32 %s503_s8, %s62_s6 }
  0x36   : > { %p81_p3 = scmp.ne.s32.totalorder %s813_s14, %s809_s13  ;;  %s64_s10 = sld [smem:[#allocation3 + %s63_s9]] }
  0x37   : > { %s68_s0 = sadd.s32 1, %s817_s15  ;;  %p975_p4 = por %p1193_p2, %p75_p1 }
  0x38   : > { %p979_p5 = scmp.eq.s32.totalorder %s500_s25, 0  ;;  %s984_s13 = sld [smem:[#allocation4 + %s959_s28]] }
  0x39   : > { %s173_s26 = sand.u32 1, %s817_s15   ;;  %p1192_p7 = scmp.lt.s32.totalorder %s837_s20, 4 }
  0x3a   : > { %p988_p6 = por %p979_p5, %p81_p3  ;;  %s508_s27 = sshll.u32 %s173_s26, 3 }
  0x3b   : > { %p998_p8 = pnand %p1192_p7, %p975_p4  ;;  %s177_s6 = scalar_lea.vmem [#allocation6], %s508_s27 }
  0x3c   : > { %s1200_s24 = scalar_select %p988_p6, 1, 0 }
  0x3d   : > { %s65_s29 = ssub.s32 %s56_s30, %s64_s10  ;;  %s192_s7 = sshll.u32 %s177_s6, 4  ;;  %s1022_s7 = int_to_ptr.vmem [resolvable:$true] %s192_s7 }
  0x3e   : > { %p66_p9 = scmp.eq.s32.totalorder %s65_s29, 0  ;;  %p514_p10 = scmp.ge.s32.totalorder %s837_s20, 1 }
  0x3f   : > { %s529_s8 = scalar_select %p975_p4, [#allocation3], [#allocation10] }
  0x40   : > { %s1005_s22 = scalar_select %p66_p9, %s817_s15, %s68_s0  }
  0x41   : > { %s530_s30 = scalar_select %p975_p4, %s959_s28, 0 }
  0x42   : > { %s1232_s8 = smov (!%p1192_p7, %s529_s8), [#allocation12]  ;;  %p223_p11 = scmp.lt.s32.totalorder %s837_s20, 5 }
  0x43   : > { %s1234_s30 = smov (!%p1192_p7, %s530_s30), 0  ;;  %s1020_s27 = sld [smem:[#allocation4 + %s63_s9]] }
  0x44   : > { %s185_s10 = sld [smem:[%s1232_s8 + %s1234_s30]]  ;;  %p1016_p12 = pnand %p514_p10, %p223_p11 }
  0x45   : > { %s110_s8 = sadd.s32 1, %s805_s12  ;;  %s174_s30 = scalar_lea.sflag [#allocation7], %s173_s26 }
  0x46   : > { %s1202_s29 = scalar_select %p1016_p12, 1, 0 }
  0x47   : > { %p683_p3 = pneg %p998_p8  ;;  %s686_s1 = scalar_lea.hbm %s1184_s3, 256 }
  0x4a   : > { %s510_s0 = sshll.u32 %s185_s10, 7 }
  0x4b   : > { %s1031_s21 = scalar_lea.hbm %s1184_s3, %s510_s0 }
  0x4c   : > { %s681_s19 = scalar_lea.hbm %s1031_s21, 128  ;;  %p687_p10 = scmp.lt.u32.totalorder %s1031_s21, %s1184_s3 }
  0x4d   : > { %p682_p1 = scmp.ne.s32.totalorder %s1031_s21, %s681_s19  ;;  %p688_p11 = scmp.lt.u32.totalorder %s686_s1, %s681_s19 }
  0x4e   : > { %p690_p13 = scmp.lt.u32.totalorder %s681_s19, %s1031_s21 }
  0x4f   : > { %p684_p4 = pnand %p683_p3, %p682_p1  ;;  %p689_p7 = por %p688_p11, %p687_p10 }
  0x51   : > { %p685_p9 = pneg %p684_p4  ;;  %p691_p2 = por %p690_p13, %p689_p7 }
  0x53   : > { %p692_p0 = pnand %p691_p2, %p685_p9 }
  0x55   : > { %695 = shalt.err (!%p692_p0)
}
  0x56   : > { %s696_s26 = scalar_lea.vmem %s1022_s7, 128  ;;  %s842_s9 = smov [#allocation6]  }
  0x57   : > { %p697_p1 = scmp.ne.s32.totalorder %s1022_s7, %s696_s26  ;;  %s701_s10 = sshll.u32 %s842_s9, 4  ;;  %s702_s10 = int_to_ptr.vmem [resolvable:$false] %s701_s10 }
  0x58   : > { %s703_s0 = scalar_lea.vmem %s702_s10, 256  ;;  %p704_p12 = scmp.lt.s32.totalorder %s1022_s7, %s702_s10 }
  0x59   : > { %p699_p4 = pnand %p697_p1, %p683_p3  ;;  %p705_p10 = scmp.lt.s32.totalorder %s703_s0, %s696_s26 }
  0x5b   : > { %p700_p6 = pneg %p699_p4  ;;  %p706_p11 = por %p705_p10, %p704_p12 }
  0x5d   : > { %p707_p7 = pnand %p706_p11, %p700_p6 }
  0x5f   : > { %710 = shalt.err (!%p707_p7)
}
  0x60   : > { %542 = dma.hbm_to_vmem [thread:$0]  (!%p998_p8), %s1031_s21, 128, %s1022_s7, %s174_s30  }
  0x61   : > { %p1203_p2 = scmp.ne.s32.totalorder %s801_s11, %s797_s2  ;;  %s199_s25 = sand.u32 1, %s805_s12  }
  0x62   : > { %s107_s1 = ssub.s32 %s984_s13, %s1020_s27  ;;  %p1205_p12 = scmp.eq.s32.totalorder %s837_s20, 0 }
  0x63   : > { %p1064_p6 = por %p1203_p2, %p979_p5  ;;  %p1206_p13 = scmp.ne.s32.totalorder %s805_s12, %s801_s11 }
  0x64   : > { %p108_p3 = scmp.eq.s32.totalorder %s107_s1, 0  ;;  %s511_s6 = sshll.u32 %s199_s25, 3 }
  0x65   : > { %p119_p0 = por %p1206_p13, %p1205_p12  ;;  %p1207_p9 = scmp.lt.s32.totalorder %s837_s20, 4 }
  0x66   : > { %s1085_s2 = scalar_select %p108_p3, %s805_s12, %s110_s8  }
  0x67   : > { %p1078_p1 = pnand %p1207_p9, %p119_p0  ;;  %s1236_s28 = smov (!%p119_p0, %s959_s28), 0 }
  0x68   : > { %s532_s21 = scalar_select %p119_p0, [#allocation4], [#allocation11] }
  0x69   : > { %p1209_p5 = pmov %p1207_p9  ;;  %s203_s13 = scalar_lea.vmem [#allocation8], %s511_s6 }
  0x6a   : > { %s218_s7 = sshll.u32 %s203_s13, 4  ;;  %s200_s8 = scalar_lea.sflag [#allocation9], %s199_s25  ;;  %s1092_s7 = int_to_ptr.vmem [resolvable:$true] %s218_s7 }
  0x6b   : > { %s1238_s21 = smov (!%p1209_p5, %s532_s21), [#allocation13]  ;;  %p1210_p8 = pmov %p1209_p5 }
  0x6c   : > { %p713_p10 = pneg %p1078_p1  ;;  %s716_s6 = scalar_lea.hbm %s1185_s4, 256 }
  0x6d   : > { %s1240_s28 = smov (!%p1210_p8, %s1236_s28), 0 }
  0x6e   : > { %s211_s23 = sld [smem:[%s1238_s21 + %s1240_s28]] }
  0x74   : > { %s513_s27 = sshll.u32 %s211_s23, 7 }
  0x75   : > { %s1097_s10 = scalar_lea.hbm %s1185_s4, %s513_s27 }
  0x76   : > { %s711_s0 = scalar_lea.hbm %s1097_s10, 128  ;;  %p717_p2 = scmp.lt.u32.totalorder %s1097_s10, %s1185_s4 }
  0x77   : > { %p712_p4 = scmp.ne.s32.totalorder %s1097_s10, %s711_s0  ;;  %p718_p12 = scmp.lt.u32.totalorder %s716_s6, %s711_s0 }
  0x78   : > { %p720_p0 = scmp.lt.u32.totalorder %s711_s0, %s1097_s10 }
  0x79   : > { %p714_p11 = pnand %p713_p10, %p712_p4  ;;  %p719_p13 = por %p718_p12, %p717_p2 }
  0x7b   : > { %p715_p7 = pneg %p714_p11  ;;  %p721_p3 = por %p720_p0, %p719_p13 }
  0x7d   : > { %p722_p9 = pnand %p721_p3, %p715_p7 }
  0x7f   : > { %725 = shalt.err (!%p722_p9)
}
  0x80   : > { %s726_s25 = scalar_lea.vmem %s1092_s7, 128  ;;  %s843_s13 = smov [#allocation8]  }
  0x81   : > { %p727_p5 = scmp.ne.s32.totalorder %s1092_s7, %s726_s25  ;;  %s731_s27 = sshll.u32 %s843_s13, 4  ;;  %s732_s27 = int_to_ptr.vmem [resolvable:$false] %s731_s27 }
  0x82   : > { %s733_s30 = scalar_lea.vmem %s732_s27, 256  ;;  %p734_p11 = scmp.lt.s32.totalorder %s1092_s7, %s732_s27 }
  0x83   : > { %p729_p8 = pnand %p727_p5, %p713_p10  ;;  %p735_p2 = scmp.lt.s32.totalorder %s733_s30, %s726_s25 }
  0x85   : > { %p730_p4 = pneg %p729_p8  ;;  %p736_p12 = por %p735_p2, %p734_p11 }
  0x87   : > { %p737_p13 = pnand %p736_p12, %p730_p4 }
  0x89   : > { %740 = shalt.err (!%p737_p13)
}
  0x8a   : > { %547 = dma.hbm_to_vmem [thread:$0]  (!%p1078_p1), %s1097_s10, 128, %s1092_s7, %s200_s8  }
  0x8b   : > { %p1211_p7 = scmp.ne.s32.totalorder %s1202_s29, 0 }
  0x8c   : > { %s229_s9 = sand.u32 (!%p1211_p7), 1, %s813_s14   ;;  %p1212_p10 = scmp.ne.s32.totalorder (!%p1211_p7), %s1200_s24, 0 }
  0x8d   : > { %227 = sbr.rel (%p1211_p7) target bundleno = 422 (0x1a6), region = 28  ;;  %s515_s0 = sshll.u32 (!%p1211_p7), %s229_s9, 3 }
  0x8e   : > { %s230_s28 = scalar_lea.sflag (!%p1211_p7), [#allocation7], %s229_s9  ;;  %s233_s1 = scalar_lea.vmem (!%p1211_p7), [#allocation6], %s515_s0 }
  0x94   : > { %788 = dma.done.wait (%p1212_p10), %s230_s28, 128  }
  0x95   : > { %790 = vsyncadd (%p1212_p10), %s230_s28, 4294967168  ;;  %s238_s26 = sand.u32 1, %s801_s11  }
  0x96   : > { %s516_s6 = sshll.u32 %s238_s26, 3  ;;  %s239_s21 = scalar_lea.sflag [#allocation9], %s238_s26 }
  0x97   : > { %s242_s7 = scalar_lea.vmem [#allocation8], %s516_s6 }
  0x98   : > { %792 = dma.done.wait (%p1064_p6), %s239_s21, 128  }
  0x99   : > { %794 = vsyncadd (%p1064_p6), %s239_s21, 4294967168  ;;  %p283_p1 = scmp.lt.s32.totalorder %s825_s17, 1  ;;  %p518_p0 = scmp.ne.s32.totalorder %s821_s16, 0 }
  0x9a   : > { %vm291_vm0 = vcmask (!%p518_p0), 64512   ;;  %v844_v0 = vmov (!%p518_p0), 0.0  }
  0x9b   : > { %s284_s29 = scalar_select %p283_p1, %s825_s17, 1 }
  0x9c   : > { %290 = sbr.rel (%p518_p0) target bundleno = 163 (0xa3), region = 40 }
  0x9d   : > { %s517_s10 = sshll.u32 %s284_s29, 3 }
  0x9e   : > { %s1141_s24 = scalar_lea.vmem %s1186_s5, %s517_s10 }
  0x9f   : > { %292 = vst.msk [vmem:[%s1141_s24] sm:$0xff] (!%p518_p0), %vm291_vm0, %v844_v0 }
  0xa3 PF: > { %v294_v1 = vld [vmem:[%s242_s7] sm:$0xff]  ;;  %v845_v2 = vmov 0.0   ;;  %vm846_vm1 = vmmov 0   ;;  %v293_v3 = vld [vmem:[%s233_s1] sm:$0xff]  ;;  %s388_s19 = sshra.s32 %s821_s16, 7  ;;  %s393_s27 = sand.u32 127, %s821_s16 }
  0xa4   : > { %524 = vmatprep.subr.mxu0 %v845_v2  ;;  %526 = vmatprep.mubr.msk.f32.mxu0 %vm846_vm1, %v845_v2  ;;  %s390_s25 = sadd.s32 %s825_s17, %s388_s19  ;;  %vm399_vm2 = vcmask 64512  }
  0xa5   : > { %525 = vmatpush3.xpose.msra.mxu0 %v294_v1  ;;  %s519_s13 = sshll.u32 %s390_s25, 7 }
  0xa6   : > { %s394_s30 = sadd.s32 %s519_s13, %s393_s27  ;;  %v387_v28 = vld [vmem:[%s1141_s24] sm:$0xff] }
  0xa7   : > { %s395_s9 = sld [smem:[#allocation5 + %s394_s30]] }
  0xa8   : > { %527 = vmatmul.mubr.f32.vlgmr.msra.gmra.mrb[0].mxu0 %v293_v3 }
  0xad   : > { %v396_v26 = vstv %s395_s9 }
 0x17b   : > { %v361_v4 = vpop.f32.mrb[0].mxu0 }
 0x17c   : > { %v365_v5 = vmul.f32 -2.0, %v361_v4  ;;  %v528_v6 = vpop.f32.mrb[1].mxu0 }
 0x17e   : > { %v366_v7 = vmax.f32 %v365_v5, 0.0 }
 0x180   : > { %v367_v8 = vmul.f32 -0.0003125, %v366_v7  ;;  %v376_v10 = vmul.f32 -0.5, %v366_v7 }
 0x182   : > { %v368_v9 = vmul.f32 1.442695, %v367_v8  ;;  %v377_v11 = vmul.f32 1.442695, %v376_v10 }
 0x184   : > { %643 = vpow2.f32 %v368_v9 }
 0x185   : > { %645 = vpow2.f32 %v377_v11 }
 0x18e   : > { %v644_v12 = vpop.eup %643 }
 0x18f   : > { %v370_v13 = vmul.f32 %v644_v12, %v644_v12  ;;  %v646_v17 = vpop.eup %645 }
 0x190   : > { %v379_v21 = vmul.f32 %v646_v17, %v646_v17 }
 0x191   : > { %v371_v14 = vmul.f32 %v370_v13, %v370_v13 }
 0x192   : > { %v380_v24 = vmul.f32 %v379_v21, %v379_v21 }
 0x193   : > { %v372_v15 = vmul.f32 %v371_v14, %v371_v14  ;;  %v381_v19 = vadd.f32 %v644_v12, %v371_v14 }
 0x195   : > { %v373_v16 = vmul.f32 %v372_v15, %v372_v15 }
 0x197   : > { %v374_v18 = vmul.f32 %v373_v16, %v373_v16  ;;  %v382_v22 = vadd.f32 %v381_v19, %v373_v16 }
 0x199   : > { %v375_v20 = vmul.f32 %v374_v18, %v374_v18 }
 0x19b   : > { %v383_v23 = vadd.f32 %v382_v22, %v375_v20 }
 0x19d   : > { %v384_v25 = vadd.f32 %v646_v17, %v383_v23 }
 0x19f   : > { %v385_v27 = vadd.f32 %v384_v25, %v380_v24 }
 0x1a1   : > { %v397_v29 = vmul.f32 %v396_v26, %v385_v27 }
 0x1a3   : > { %v398_v30 = vadd.f32 %v397_v29, %v387_v28 }
 0x1a5   : > { %400 = vst.msk [vmem:[%s1141_s24] sm:$0xff] %vm399_vm2, %v398_v30 }
 0x1a6 PF: > { %s33_s20 = sadd.s32 1, %s837_s20   ;;  %s1213_s16 = smov %s1085_s2 }
 0x1a7   : > { %p30_p6 = scmp.ge.s32.totalorder %s33_s20, 6   ;;  %s1214_s17 = sld [smem:[#allocation17_spill]] }
 0x1a8   : > { %s1215_s0 = sld [smem:[#allocation18_spill]]  ;;  %s1216_s19 = sld [smem:[#allocation19_spill]] }
 0x1a9   : > { %s1217_s2 = smov %s801_s11  ;;  %s1218_s11 = smov %s805_s12 }
 0x1aa   : > { %s1219_s12 = smov %s1213_s16  ;;  %s1220_s13 = smov %s813_s14 }
 0x1ab   : > { %s1221_s14 = smov %s817_s15  ;;  %s1222_s15 = smov %s1005_s22 }
 0x1ac   : > { %s1223_s16 = smov %s829_s18  ;;  %32 = sbr.rel (!%p30_p6) target bundleno = 42 (0x2a), region = 85 }
 0x1ae   : > { %s1224_s18 = smov %s1215_s0 }
 0x1b3   :  { %420 = vsyncpa [#allocation7], 1 }
 0x1b4   :  { %422 = vsyncpa [#allocation7 + $0x1], 1 }
 0x1b5   :  { %423 = vsyncpa [#allocation9], 1 }
 0x1b6   :  { %425 = vsyncpa [#allocation9 + $0x1], 1 }

</bundles_post_ra>
